<compile_context>
chip_gen: v7x
topology: tpu7x:2x2x1
jax: 0.10.0
libtpu: 0.0.40
codegen_flags: <defaults>
</compile_context>

<pallas_src>
import math
import numpy as np

import jax
import jax.numpy as jnp
from jax.experimental import pallas as pl
from jax.experimental.pallas import tpu as pltpu


def _cdiv(a, b):
    return -(-a // b)


def _round_up(x, m):
    return -(-x // m) * m


# --------------------- generation-aware VMEM / core params -------------------

_TPU_PARAMS_CACHE = None


def _tpu_params():
    """Pick VMEM budget / scoped limit / TC count from the chip generation.

    v7x:   64 MiB VMEM per TensorCore, 2 TCs/chip  -> tight budget, keep >=2 steps
    v5e/v6e: 128 MiB VMEM, 1 TC/chip               -> larger tiles, explicit limit
    """
    global _TPU_PARAMS_CACHE
    if _TPU_PARAMS_CACHE is None:
        try:
            vmem_cap = int(pltpu.get_tpu_info().vmem_capacity_bytes)
        except Exception:
            vmem_cap = 64 << 20  # conservative fallback (v7x-sized)
        if vmem_cap <= (96 << 20):
            # v7x-like: small VMEM, 2 TensorCores, very high HBM BW.
            _TPU_PARAMS_CACHE = dict(vmem_budget=20 << 20,
                                     vmem_limit=30 << 20,
                                     num_tc=2)
        else:
            # v5e / v6e: 128 MiB physical VMEM, single TensorCore.
            # (raising above v5e's 16 MiB scoped default is OK because we set
            #  vmem_limit_bytes explicitly below.)
            _TPU_PARAMS_CACHE = dict(vmem_budget=24 << 20,
                                     vmem_limit=48 << 20,
                                     num_tc=1)
    return _TPU_PARAMS_CACHE


def _pick_token_tile(C, L, n_tok, batch, itemsize, *,
                     vmem_budget_bytes, num_tc=1, max_tile=4096):
    """Largest token tile (multiple of 128, or full extent) within the VMEM budget.

    Per-token live bytes:
      2x double-buffered input tile + 2x double-buffered output tile (native dtype)
      + f32 copy of x (residual) + f32 hidden (L) + f32 adapter output (C),
      all multiplied by 1.3x headroom for erf/GELU temporaries & Mosaic scratch.
    The resident (double-buffered) f32 weights/biases are subtracted up front.
    """
    per_tok = 2 * C * itemsize          # input tile, 2 pipeline buffers
    per_tok += 2 * C * itemsize         # output tile, 2 pipeline buffers
    per_tok += 4 * C                    # f32 residual copy of x
    per_tok += 4 * L                    # f32 hidden
    per_tok += 4 * C                    # f32 adapter output
    per_tok = int(per_tok * 1.3) + 1

    weight_bytes = 2 * (2 * L * C * 4)                                   # W1, W2 x2 bufs
    weight_bytes += 2 * (_round_up(L, 8) + _round_up(C, 8)) * 128 * 4    # padded biases
    budget = max(vmem_budget_bytes - weight_bytes, 1 << 20)

    tn = min(budget // per_tok, max_tile)
    tn = max(128, (tn // 128) * 128)
    if tn >= n_tok:
        tn = n_tok                       # single full-extent token block per batch row

    # Only split further when there is a second TensorCore (v7x) to feed.
    while num_tc > 1 and batch * _cdiv(n_tok, tn) < num_tc and tn > 128:
        tn = max(128, ((tn // 2) // 128) * 128)
    return tn


# ------------------------------ Pallas kernels --------------------------------

_INV_SQRT2 = np.float32(1.0 / math.sqrt(2.0))


def _gelu_exact_f32(h):
    # exact (erf-based) GELU — matches torch.nn.GELU default.
    # TODO(synk): a tanh-approx GELU would route to the EUP (helps only if a v5e
    # bundle dump shows the VALU slot saturating) — kept exact for parity.
    return 0.5 * h * (1.0 + jax.lax.erf(h * _INV_SQRT2))


def _res_adapter_cf_kernel(x_ref, w1t_ref, b1_ref, w2t_ref, b2_ref, o_ref):
    """Channels-first tile: x (C, tn); out = x + ln2(gelu(ln1(x))).

    Token axis on lanes (multiple of 128) -> lane-dense stores.  Weights are f32
    and x is up-cast in-register, matching PyTorch's compute-in-weight-dtype.
    NOTE: for tiny C (< 8) the (C, tn) block under-fills vreg sublanes; production
    C (>= 128) fully occupies them.  Columns of a padded partial tile compute on
    garbage but writes are masked and columns are independent.
    """
    xf = x_ref[...].astype(jnp.float32)                              # (C, tn)
    h = jnp.dot(w1t_ref[...], xf, preferred_element_type=jnp.float32)  # (L, tn)
    h = _gelu_exact_f32(h + b1_ref[...])                             # (L,1) broadcast
    y = jnp.dot(w2t_ref[...], h, preferred_element_type=jnp.float32)   # (C, tn)
    y = y + b2_ref[...]                                              # (C,1) broadcast
    o_ref[...] = (xf + y).astype(o_ref.dtype)


def _res_adapter_tm_kernel(x_ref, w1_ref, b1_ref, w2_ref, b2_ref, o_ref):
    """Tokens-major tile: x (tn, C); out = x + (gelu(x@W1+b1)@W2 + b2).

    Used for the 3D (B, N, C) path so NO wrapper transposes are needed.
    """
    xf = x_ref[...].astype(jnp.float32)                              # (tn, C)
    h = jnp.dot(xf, w1_ref[...], preferred_element_type=jnp.float32)   # (tn, L)
    h = _gelu_exact_f32(h + b1_ref[...])                             # (1,L) broadcast
    y = jnp.dot(h, w2_ref[...], preferred_element_type=jnp.float32)    # (tn, C)
    y = y + b2_ref[...]                                              # (1,C) broadcast
    o_ref[...] = (xf + y).astype(o_ref.dtype)


# ------------------------------ pallas_call wrappers ---------------------------

def res_adapter_channels_first(x_cf, w1t, b1c, w2t, b2c, *, token_tile=None):
    """x_cf: (B, C, N) channels-first tokens. Returns x_cf + adapter(x_cf)."""
    B, C, N = x_cf.shape
    L = w1t.shape[0]
    itemsize = np.dtype(x_cf.dtype).itemsize
    params = _tpu_params()
    tn = token_tile or _pick_token_tile(C, L, N, B, itemsize,
                                        vmem_budget_bytes=params["vmem_budget"],
                                        num_tc=params["num_tc"])
    grid = (B, _cdiv(N, tn))

    return pl.pallas_call(
        _res_adapter_cf_kernel,
        out_shape=jax.ShapeDtypeStruct((B, C, N), x_cf.dtype),
        grid_spec=pltpu.PrefetchScalarGridSpec(
            num_scalar_prefetch=0,
            grid=grid,
            in_specs=[
                pl.BlockSpec((None, C, tn), lambda b, t: (b, 0, t)),  # x tile
                pl.BlockSpec((L, C), lambda b, t: (0, 0)),            # W1^T (resident)
                pl.BlockSpec((L, 1), lambda b, t: (0, 0)),            # b1
                pl.BlockSpec((C, L), lambda b, t: (0, 0)),            # W2^T (resident)
                pl.BlockSpec((C, 1), lambda b, t: (0, 0)),            # b2
            ],
            out_specs=pl.BlockSpec((None, C, tn), lambda b, t: (b, 0, t)),
        ),
        input_output_aliases={0: 0},   # residual consumes x; reuse its HBM buffer
        compiler_params=pltpu.CompilerParams(
            dimension_semantics=("parallel", "parallel"),
            vmem_limit_bytes=params["vmem_limit"],
        ),
    )(x_cf, w1t, b1c, w2t, b2c)


def res_adapter_tokens_major(x, w1, b1r, w2, b2r, *, token_tile=None):
    """x: (B, N, C) tokens. Returns x + adapter(x) with no layout changes."""
    B, N, C = x.shape
    L = w1.shape[1]
    itemsize = np.dtype(x.dtype).itemsize
    params = _tpu_params()
    tn = token_tile or _pick_token_tile(C, L, N, B, itemsize,
                                        vmem_budget_bytes=params["vmem_budget"],
                                        num_tc=params["num_tc"])
    grid = (B, _cdiv(N, tn))

    return pl.pallas_call(
        _res_adapter_tm_kernel,
        out_shape=jax.ShapeDtypeStruct((B, N, C), x.dtype),
        grid_spec=pltpu.PrefetchScalarGridSpec(
            num_scalar_prefetch=0,
            grid=grid,
            in_specs=[
                pl.BlockSpec((None, tn, C), lambda b, t: (b, t, 0)),  # x tile
                pl.BlockSpec((C, L), lambda b, t: (0, 0)),            # W1 (resident)
                pl.BlockSpec((1, L), lambda b, t: (0, 0)),            # b1
                pl.BlockSpec((L, C), lambda b, t: (0, 0)),            # W2 (resident)
                pl.BlockSpec((1, C), lambda b, t: (0, 0)),            # b2
            ],
            out_specs=pl.BlockSpec((None, tn, C), lambda b, t: (b, t, 0)),
        ),
        input_output_aliases={0: 0},
        compiler_params=pltpu.CompilerParams(
            dimension_semantics=("parallel", "parallel"),
            vmem_limit_bytes=params["vmem_limit"],
        ),
    )(x, w1, b1r, w2, b2r)


# ------------------------- jitted forwards (hoisted) ---------------------------

@jax.jit
def _forward_nchw(x, w1t, b1c, w2t, b2c):
    B, C, H, W = x.shape
    # NCHW -> (B, C, HW) is a pure reshape: the channels-first kernel needs NO
    # transpose on either side of the pallas_call.
    x_cf = x.reshape(B, C, H * W)
    out = res_adapter_channels_first(x_cf, w1t, b1c, w2t, b2c)
    return out.reshape(B, C, H, W)


@jax.jit
def _forward_tokens(x, w1, b1r, w2, b2r):
    # (B, N, C) handled directly by the tokens-major kernel: no transposes.
    return res_adapter_tokens_major(x, w1, b1r, w2, b2r)


# ------------------------------ Module wrapper ----------------------------------

class ResTunerPallas:
    """JAX/Pallas port of ResTuner(tuner_cfg='res_adapter')."""

    def __init__(self, dim, layer_num=-1, depth=-1, zero_init_last=False,
                 tuner_cfg="res_adapter", adapter_length=32, seed=0):
        self.dim = dim
        self.tuner_cfg = tuner_cfg
        self.adapter_length = adapter_length

        key = jax.random.PRNGKey(seed)
        k1, k2, k3, k4 = jax.random.split(key, 4)

        # ln1 : xavier_uniform weight (C, L), bias ~ N(0, 1e-6)
        bound1 = math.sqrt(6.0 / (dim + adapter_length))
        self.w1 = jax.random.uniform(k1, (dim, adapter_length), jnp.float32,
                                     minval=-bound1, maxval=bound1)
        self.b1 = jax.random.normal(k2, (adapter_length,), jnp.float32) * 1e-6

        # ln2 : xavier_uniform (L, C) (zero-init if last layer & zero_init_last)
        if zero_init_last and layer_num == depth - 1:
            self.w2 = jnp.zeros((adapter_length, dim), jnp.float32)
            self.b2 = jnp.zeros((dim,), jnp.float32)
        else:
            bound2 = math.sqrt(6.0 / (adapter_length + dim))
            self.w2 = jax.random.uniform(k3, (adapter_length, dim), jnp.float32,
                                         minval=-bound2, maxval=bound2)
            self.b2 = jax.random.normal(k4, (dim,), jnp.float32) * 1e-6

        L, C = adapter_length, dim
        # Precomputed operand layouts (f32, matching PyTorch's compute dtype):
        #   channels-first kernel:   h = W1^T @ x,  y = W2^T @ h
        self._w1t = jnp.asarray(self.w1.T)              # (L, C)
        self._w2t = jnp.asarray(self.w2.T)              # (C, L)
        self._b1c = self.b1.reshape(L, 1)
        self._b2c = self.b2.reshape(C, 1)
        #   tokens-major kernel:     h = x @ W1,    y = h @ W2
        self._b1r = self.b1.reshape(1, L)
        self._b2r = self.b2.reshape(1, C)

        # adapter_weight is None for tuner_cfg='res_adapter' -> no gate/scale.
        # TODO(synk): 'gate'/'scale' adapter_weight variants not implemented.

    def __call__(self, x):
        # Mirrors ResTuner.forward: any cfg containing 'zero' short-circuits to 0.0
        # (same substring check as the PyTorch module).
        if self.tuner_cfg == "zero" or "zero" in self.tuner_cfg:
            return 0.0

        if x.ndim == 4:
            B, C, H, W = x.shape
            assert C == self.dim
            return _forward_nchw(x, self._w1t, self._b1c, self._w2t, self._b2c)
        else:
            B, N, C = x.shape
            assert C == self.dim
            return _forward_tokens(x, self.w1, self._b1r, self.w2, self._b2r)


# ------------------------------ references -----------------------------------

def _gelu_exact(h):
    return 0.5 * h * (1.0 + jax.lax.erf(h / np.sqrt(2.0)))


def _reference_nchw(x, mod: ResTunerPallas):
    x = x.astype(jnp.float32)
    B, C, H, W = x.shape
    t = jnp.transpose(x.reshape(B, C, H * W), (0, 2, 1))          # (B, HW, C)
    h = _gelu_exact(t @ mod.w1 + mod.b1)
    y = h @ mod.w2 + mod.b2
    out = t + y
    return jnp.transpose(out, (0, 2, 1)).reshape(B, C, H, W)


def _reference_tokens(x, mod: ResTunerPallas):
    x = x.astype(jnp.float32)                                     # (B, N, C)
    h = _gelu_exact(x @ mod.w1 + mod.b1)
    return x + (h @ mod.w2 + mod.b2)


# -------------------------------- main ----------------------------------------

if __name__ == "__main__":
    key = jax.random.PRNGKey(0)
    kx, kx3 = jax.random.split(key, 2)

    # --- 4D NCHW path (channels-first kernel): B=2, C=4, H=W=16 ---------------
    B, C, H, W = 2, 4, 16, 16
    x = jax.random.normal(kx, (B, C, H, W), jnp.float32)
    tuner = ResTunerPallas(dim=C, layer_num=0, depth=4, zero_init_last=False,
                           tuner_cfg="res_adapter", adapter_length=32, seed=0)
    out = jax.block_until_ready(tuner(x))
    ref = _reference_nchw(x, tuner)
    assert out.shape == (B, C, H, W)
    np.testing.assert_allclose(np.asarray(out), np.asarray(ref),
                               rtol=1e-5, atol=1e-5)

    # --- 3D (B, N, C) token path (tokens-major kernel, no transposes) ---------
    x3 = jax.random.normal(kx3, (2, 256, 8), jnp.float32)
    tuner3 = ResTunerPallas(dim=8, tuner_cfg="res_adapter",
                            adapter_length=32, seed=1)
    out3 = jax.block_until_ready(tuner3(x3))
    ref3 = _reference_tokens(x3, tuner3)
    np.testing.assert_allclose(np.asarray(out3), np.asarray(ref3),
                               rtol=1e-5, atol=1e-5)

    # --- bf16 activations stay bf16 in HBM; compute is f32 (matches torch) ----
    xb = x.astype(jnp.bfloat16)
    outb = jax.block_until_ready(tuner(xb))
    assert outb.dtype == jnp.bfloat16
    refb = _reference_nchw(xb.astype(jnp.float32), tuner)
    np.testing.assert_allclose(np.asarray(outb.astype(jnp.float32)),
                               np.asarray(refb), rtol=2e-2, atol=2e-2)

    x3b = x3.astype(jnp.bfloat16)
    out3b = jax.block_until_ready(tuner3(x3b))
    assert out3b.dtype == jnp.bfloat16
    ref3b = _reference_tokens(x3b.astype(jnp.float32), tuner3)
    np.testing.assert_allclose(np.asarray(out3b.astype(jnp.float32)),
                               np.asarray(ref3b), rtol=2e-2, atol=2e-2)

    print("KERNEL_OK")
</pallas_src>

<mosaic_0001>
module attributes {stable_mosaic.version = 11 : i64} {
  func.func @_res_adapter_cf_kernel(%arg0: i32, %arg1: i32, %arg2: memref<1x4x256xf32, #tpu.memory_space<vmem>>, %arg3: memref<32x4xf32, #tpu.memory_space<vmem>>, %arg4: memref<32x1xf32, #tpu.memory_space<vmem>>, %arg5: memref<4x32xf32, #tpu.memory_space<vmem>>, %arg6: memref<4x1xf32, #tpu.memory_space<vmem>>, %arg7: memref<1x4x256xf32, #tpu.memory_space<vmem>>) attributes {dimension_semantics = [#tpu.dimension_semantics<parallel>, #tpu.dimension_semantics<parallel>], iteration_bounds = array<i64: 2, 1>, scalar_prefetch = 0 : i64, scratch_operands = 0 : i64, tpu.core_type = #tpu.core_type<tc>, window_params = [{transform_indices = @transform_0, window_bounds = array<i64: 1, 4, 256>}, {pipeline_mode = #tpu.pipeline_mode<synchronous>, transform_indices = @transform_1, window_bounds = array<i64: 32, 4>}, {pipeline_mode = #tpu.pipeline_mode<synchronous>, transform_indices = @transform_2, window_bounds = array<i64: 32, 1>}, {pipeline_mode = #tpu.pipeline_mode<synchronous>, transform_indices = @transform_3, window_bounds = array<i64: 4, 32>}, {pipeline_mode = #tpu.pipeline_mode<synchronous>, transform_indices = @transform_4, window_bounds = array<i64: 4, 1>}, {transform_indices = @transform_5, window_bounds = array<i64: 1, 4, 256>}]} {
    %c0 = arith.constant 0 : index
    %c0_0 = arith.constant 0 : index
    %c0_1 = arith.constant 0 : index
    %0 = vector.load %arg2[%c0, %c0_0, %c0_1] : memref<1x4x256xf32, #tpu.memory_space<vmem>>, vector<1x4x256xf32>
    %1 = vector.shape_cast %0 : vector<1x4x256xf32> to vector<4x256xf32>
    %c0_2 = arith.constant 0 : index
    %c0_3 = arith.constant 0 : index
    %2 = vector.load %arg3[%c0_2, %c0_3] : memref<32x4xf32, #tpu.memory_space<vmem>>, vector<32x4xf32>
    %cst = arith.constant dense<0.000000e+00> : vector<32x256xf32>
    %3 = tpu.matmul %2, %1, %cst {dimension_numbers = #tpu.dot_dimension_numbers<[1], [0], [0], [1], [0, 0, 1, 1], [], []>} : vector<32x4xf32>, vector<4x256xf32>, vector<32x256xf32> -> vector<32x256xf32>
    %c0_4 = arith.constant 0 : index
    %c0_5 = arith.constant 0 : index
    %4 = vector.load %arg4[%c0_4, %c0_5] : memref<32x1xf32, #tpu.memory_space<vmem>>, vector<32x1xf32>
    %5 = vector.broadcast %4 : vector<32x1xf32> to vector<32x256xf32>
    %6 = arith.addf %3, %5 : vector<32x256xf32>
    %cst_6 = arith.constant 5.000000e-01 : f32
    %7 = vector.broadcast %cst_6 : f32 to vector<32x256xf32>
    %8 = arith.mulf %7, %6 : vector<32x256xf32>
    %cst_7 = arith.constant 0.707106769 : f32
    %9 = vector.broadcast %cst_7 : f32 to vector<32x256xf32>
    %10 = arith.mulf %6, %9 : vector<32x256xf32>
    %11 = math.erf %10 : vector<32x256xf32>
    %cst_8 = arith.constant 1.000000e+00 : f32
    %12 = vector.broadcast %cst_8 : f32 to vector<32x256xf32>
    %13 = arith.addf %12, %11 : vector<32x256xf32>
    %14 = arith.mulf %8, %13 : vector<32x256xf32>
    %c0_9 = arith.constant 0 : index
    %c0_10 = arith.constant 0 : index
    %15 = vector.load %arg5[%c0_9, %c0_10] : memref<4x32xf32, #tpu.memory_space<vmem>>, vector<4x32xf32>
    %cst_11 = arith.constant dense<0.000000e+00> : vector<4x256xf32>
    %16 = tpu.matmul %15, %14, %cst_11 {dimension_numbers = #tpu.dot_dimension_numbers<[1], [0], [0], [1], [0, 0, 1, 1], [], []>} : vector<4x32xf32>, vector<32x256xf32>, vector<4x256xf32> -> vector<4x256xf32>
    %c0_12 = arith.constant 0 : index
    %c0_13 = arith.constant 0 : index
    %17 = vector.load %arg6[%c0_12, %c0_13] : memref<4x1xf32, #tpu.memory_space<vmem>>, vector<4x1xf32>
    %18 = vector.broadcast %17 : vector<4x1xf32> to vector<4x256xf32>
    %19 = arith.addf %16, %18 : vector<4x256xf32>
    %20 = arith.addf %1, %19 : vector<4x256xf32>
    %c0_14 = arith.constant 0 : index
    %c0_15 = arith.constant 0 : index
    %c0_16 = arith.constant 0 : index
    %21 = vector.load %arg7[%c0_14, %c0_15, %c0_16] : memref<1x4x256xf32, #tpu.memory_space<vmem>>, vector<1x4x256xf32>
    %22 = vector.shape_cast %21 : vector<1x4x256xf32> to vector<4x256xf32>
    %23 = vector.shape_cast %20 : vector<4x256xf32> to vector<1x4x256xf32>
    tpu.vector_store %arg7[%c0_14, %c0_15, %c0_16], %23 {strides = array<i32>} : memref<1x4x256xf32, #tpu.memory_space<vmem>>, vector<1x4x256xf32>,
    return
  }
  func.func @transform_0(%arg0: i32, %arg1: i32) -> (i32, i32, i32) {
    %c0_i32 = arith.constant 0 : i32
    %c0_i32_0 = arith.constant 0 : i32
    return %arg0, %c0_i32, %arg1 : i32, i32, i32
  }
  func.func @transform_1(%arg0: i32, %arg1: i32) -> (i32, i32) {
    %c0_i32 = arith.constant 0 : i32
    %c0_i32_0 = arith.constant 0 : i32
    %c0_i32_1 = arith.constant 0 : i32
    return %c0_i32, %c0_i32_0 : i32, i32
  }
  func.func @transform_2(%arg0: i32, %arg1: i32) -> (i32, i32) {
    %c0_i32 = arith.constant 0 : i32
    %c0_i32_0 = arith.constant 0 : i32
    %c0_i32_1 = arith.constant 0 : i32
    return %c0_i32, %c0_i32_0 : i32, i32
  }
  func.func @transform_3(%arg0: i32, %arg1: i32) -> (i32, i32) {
    %c0_i32 = arith.constant 0 : i32
    %c0_i32_0 = arith.constant 0 : i32
    %c0_i32_1 = arith.constant 0 : i32
    return %c0_i32, %c0_i32_0 : i32, i32
  }
  func.func @transform_4(%arg0: i32, %arg1: i32) -> (i32, i32) {
    %c0_i32 = arith.constant 0 : i32
    %c0_i32_0 = arith.constant 0 : i32
    %c0_i32_1 = arith.constant 0 : i32
    return %c0_i32, %c0_i32_0 : i32, i32
  }
  func.func @transform_5(%arg0: i32, %arg1: i32) -> (i32, i32, i32) {
    %c0_i32 = arith.constant 0 : i32
    %c0_i32_0 = arith.constant 0 : i32
    return %arg0, %c0_i32, %arg1 : i32, i32, i32
  }
}

</mosaic_0001>

<bundles_post_ra>
// kernel: _forward_nchw.1
= control target key start
LH: loop header
LB: loop body
LE: loop exit
PB: predicated region body
PF: predicated region fallthrough
CT: control target
= control target key end

     0   :  { %s746_s18 = smov 0   ;;  %s748_s19 = smov 0   ;;  %s822_s0 = inlined_call_operand.vmem [shape: f32[2,4,256], index: 0, kind: input, shape index: {}, may-alias: {0,5}]   ;;  %s823_s1 = inlined_call_operand.vmem [shape: f32[32,4], index: 1, kind: input, shape index: {}]   ;;  %s824_s2 = inlined_call_operand.vmem [shape: f32[32,1], index: 2, kind: input, shape index: {}]   ;;  %s825_s3 = inlined_call_operand.vmem [shape: f32[4,32], index: 3, kind: input, shape index: {}]   ;;  %s826_s4 = inlined_call_operand.vmem [shape: f32[4,1], index: 4, kind: input, shape index: {}]   ;;  %s827_s5 = inlined_call_operand.vmem [shape: f32[2,4,256], index: 5, kind: output, shape index: {}, may-alias: {0,5}]  }
   0x1   :  { %s750_s20 = smov 0  }
   0x2 LB: > { %s27_s21 = sadd.s32 1, %s708_s19  ;;  %p621_p0 = scmp.ge.s32.totalorder %s712_s20, 1  ;;  %s712_s20 = sphi %s750_s20, %s15_s20   ;;  %s708_s19 = sphi %s748_s19, %s829_s19   ;;  %s704_s18 = sphi %s746_s18, %s828_s18  }
   0x3   : > { %p29_p1 = scmp.ge.s32.totalorder %s27_s21, 2  ;;  %p208_p2 = scmp.lt.s32.totalorder %s712_s20, 3 }
   0x5   : > { %s831_s21 = smov (%p29_p1, %s27_s21), 0  ;;  %p209_p3 = pnand %p621_p0, %p208_p2 }
   0x6   : > { %p245_p4 = scmp.lt.s32.totalorder (!%p209_p3), %s704_s18, 1  ;;  %v714_v0 = vmov (!%p209_p3), 0.0   ;;  %v269_v1 = vld [vmem:[%s824_s2] sm:$0xff] (!%p209_p3)  ;;  %v715_v2 = vmov (!%p209_p3), 0   ;;  %v271_v3 = vld [vmem:[%s824_s2 + $0x10] sm:$0xff] (!%p209_p3)  ;;  %v270_v4 = vld [vmem:[%s824_s2 + $0x8] sm:$0xff] (!%p209_p3) }
   0x7   : > { %212 = sbr.rel (%p209_p3) target bundleno = 492 (0x1ec), region = 40  ;;  %377 = vmatprep.mubr.f32.mxu0 (!%p209_p3), %v714_v0  ;;  %517 = vmatprep.mubr.f32.mxu1 (!%p209_p3), %v714_v0  ;;  %v272_v5 = vld [vmem:[%s824_s2 + $0x18] sm:$0xff] (!%p209_p3)  ;;  %vm308_vm0 = vcmask (!%p209_p3), 1043456   ;;  %v265_v8 = vld [vmem:[%s823_s1] sm:$0xff] (!%p209_p3)  ;;  %vm295_vm1 = vcmask (!%p209_p3), 31744   ;;  %v266_v10 = vld [vmem:[%s823_s1 + $0x8] sm:$0xff] (!%p209_p3) }
   0x8   : > { %671 = vset.pattern.permute.xlu0 (!%p209_p3), %v715_v2  ;;  %672 = vset.pattern.permute.xlu1 (!%p209_p3), %v715_v2  ;;  %v443_v9 = vld [vmem:[%s826_s4] sm:$0xf] (!%p209_p3)  ;;  %v267_v11 = vld [vmem:[%s823_s1 + $0x10] sm:$0xff] (!%p209_p3)  ;;  %v268_v12 = vld [vmem:[%s823_s1 + $0x18] sm:$0xff] (!%p209_p3)  ;;  %vm449_vm2 = vcmask (!%p209_p3), 261120  }
   0x9   : > { %275 = vperm.xlu0 (!%p209_p3), %671, %v269_v1   ;;  %285 = vperm.xlu1 (!%p209_p3), %672, %v271_v3  }
   0xd   : > { %280 = vperm.xlu0 (!%p209_p3), %671, %v270_v4   ;;  %290 = vperm.xlu1 (!%p209_p3), %672, %v272_v5  }
   0xe   : > { %s833_s18 = smov (!%p245_p4, %s704_s18), 1 }
   0xf   : > { %s635_s26 = sshll.u32 %s833_s18, 3 }
  0x10   : > { %s252_s8 = scalar_lea.vmem %s822_s0, %s635_s26  ;;  %s262_s28 = scalar_lea.vmem %s827_s5, %s635_s26 }
  0x11   : > { %v784_v6 = vld [vmem:[%s252_s8] sm:$0xff]  ;;  %446 = vperm.xlu0 %671, %v443_v9  }
  0x12   : > { %v294_v7 = vcombine.high %v784_v6, %v784_v6 }
  0x14   : > { %626 = vmatprep.subr.msk.mxu0 %vm308_vm0, %v294_v7 }
  0x15   : > { %627 = vmatpush1.msk.msra.mxu0 %vm308_vm0, %v784_v6 }
  0x16   : > { %628 = vmatmul.mubr.msk.f32.vlgmr.msra.gmra.mrb[0].mxu0 %vm295_vm1, %v265_v8 }
  0x17   : > { %383 = vmatprep.mubr.f32.mxu0 %v714_v0 }
  0x1a   : > { %629 = vmatmul.mubr.msk.f32.gmra.mrb[2].mxu0 %vm295_vm1, %v266_v10 }
  0x1b   : > { %389 = vmatprep.mubr.f32.mxu0 %v714_v0 }
  0x1e   : > { %630 = vmatmul.mubr.msk.f32.gmra.mrb[4].mxu0 %vm295_vm1, %v267_v11 }
  0x1f   : > { %395 = vmatprep.mubr.f32.mxu0 %v714_v0 }
  0x22   : > { %631 = vmatmul.mubr.msk.f32.gmra.mrb[6].mxu0 %vm295_vm1, %v268_v12 }
  0x88   : > { %v276_v13 = vpop.permute.xlu0 %275  ;;  %v286_v24 = vpop.permute.xlu1 %285 }
  0x8c   : > { %v281_v19 = vpop.permute.xlu0 %280  ;;  %v291_v33 = vpop.permute.xlu1 %290 }
  0xe9   : > { %v379_v14 = vpop.f32.mrb[0].mxu0 }
  0xea   : > { %v380_v15 = vadd.f32 %v379_v14, %v276_v13  ;;  %v381_v16 = vpop.f32.mrb[1].mxu0  ;;  %v442_v14 = vld [vmem:[%s825_s3] sm:$0xf] }
  0xeb   : > { %v382_v17 = vadd.f32 %v381_v16, %v276_v13 }
  0xec   : > { %v410_v18 = vmul.f32 0.70710677, %v380_v15  ;;  %v402_v47 = vmul.f32 0.5, %v380_v15  ;;  %v447_v15 = vpop.permute.xlu0 %446 }
  0xed   : > { %v411_v20 = vmul.f32 0.70710677, %v382_v17  ;;  %v385_v21 = vpop.f32.mrb[2].mxu0  ;;  %v403_v50 = vmul.f32 0.5, %v382_v17 }
  0xee   : > { %674 = verf.f32 %v410_v18  ;;  %v386_v22 = vadd.f32 %v385_v21, %v281_v19  ;;  %v387_v23 = vpop.f32.mrb[3].mxu0 }
  0xef   : > { %676 = verf.f32 %v411_v20  ;;  %v388_v25 = vadd.f32 %v387_v23, %v281_v19 }
  0xf0   : > { %v412_v26 = vmul.f32 0.70710677, %v386_v22  ;;  %v404_v48 = vmul.f32 0.5, %v386_v22 }
  0xf1   : > { %v413_v27 = vmul.f32 0.70710677, %v388_v25  ;;  %v391_v28 = vpop.f32.mrb[4].mxu0  ;;  %v405_v51 = vmul.f32 0.5, %v388_v25 }
  0xf2   : > { %678 = verf.f32 %v412_v26  ;;  %v392_v29 = vadd.f32 %v391_v28, %v286_v24  ;;  %v393_v30 = vpop.f32.mrb[5].mxu0 }
  0xf3   : > { %680 = verf.f32 %v413_v27  ;;  %v394_v31 = vadd.f32 %v393_v30, %v286_v24 }
  0xf4   : > { %v414_v32 = vmul.f32 0.70710677, %v392_v29  ;;  %v406_v1 = vmul.f32 0.5, %v392_v29 }
  0xf5   : > { %v415_v34 = vmul.f32 0.70710677, %v394_v31  ;;  %v397_v35 = vpop.f32.mrb[6].mxu0  ;;  %v407_v4 = vmul.f32 0.5, %v394_v31 }
  0xf6   : > { %682 = verf.f32 %v414_v32  ;;  %v398_v36 = vadd.f32 %v397_v35, %v291_v33  ;;  %v399_v37 = vpop.f32.mrb[7].mxu0 }
  0xf7   : > { %684 = verf.f32 %v415_v34  ;;  %v400_v38 = vadd.f32 %v399_v37, %v291_v33 }
  0xf8   : > { %v675_v39 = vpop.eup %674  ;;  %v416_v40 = vmul.f32 0.70710677, %v398_v36  ;;  %v408_v2 = vmul.f32 0.5, %v398_v36 }
  0xf9   : > { %v677_v41 = vpop.eup %676  ;;  %v417_v42 = vmul.f32 0.70710677, %v400_v38  ;;  %v426_v43 = vadd.f32 1.0, %v675_v39  ;;  %v409_v5 = vmul.f32 0.5, %v400_v38 }
  0xfa   : > { %686 = verf.f32 %v416_v40  ;;  %v427_v45 = vadd.f32 1.0, %v677_v41 }
  0xfb   : > { %688 = verf.f32 %v417_v42  ;;  %v434_v53 = vmul.f32 %v426_v43, %v402_v47 }
  0xfc   : > { %v679_v44 = vpop.eup %678  ;;  %v435_v56 = vmul.f32 %v427_v45, %v403_v50 }
  0xfd   : > { %v681_v46 = vpop.eup %680  ;;  %v428_v49 = vadd.f32 1.0, %v679_v44 }
  0xfe   : > { %v429_v52 = vadd.f32 1.0, %v681_v46 }
  0xff   : > { %v436_v54 = vmul.f32 %v428_v49, %v404_v48 }
 0x100   : > { %v683_v55 = vpop.eup %682  ;;  %v437_v57 = vmul.f32 %v429_v52, %v405_v51 }
 0x101   : > { %v685_v58 = vpop.eup %684  ;;  %v639_v59 = vpack.c.bf16 %v436_v54, %v434_v53  ;;  %v430_v61 = vadd.f32 1.0, %v683_v55 }
 0x102   : > { %v637_v60 = vpack.c.bf16 %v437_v57, %v435_v56  ;;  %v431_v63 = vadd.f32 1.0, %v685_v58 }
 0x103   : > { %v438_v8 = vmul.f32 %v430_v61, %v406_v1 }
 0x104   : > { %v687_v62 = vpop.eup %686  ;;  %638 = vmatprep.subr.bf16.mxu1 %v637_v60  ;;  %v439_v10 = vmul.f32 %v431_v63, %v407_v4 }
 0x105   : > { %v689_v0 = vpop.eup %688  ;;  %v432_v3 = vadd.f32 1.0, %v687_v62  ;;  %640 = vmatpush1.bf16.msra.mxu1 %v639_v59 }
 0x106   : > { %v433_v7 = vadd.f32 1.0, %v689_v0 }
 0x107   : > { %v440_v9 = vmul.f32 %v432_v3, %v408_v2 }
 0x108   : > { %v441_v11 = vmul.f32 %v433_v7, %v409_v5 }
 0x109   : > { %v643_v12 = vpack.c.bf16 %v440_v9, %v438_v8 }
 0x10a   : > { %v641_v13 = vpack.c.bf16 %v441_v11, %v439_v10 }
 0x10c   : > { %642 = vmatprep.subr.bf16.mxu1 %v641_v13 }
 0x10d   : > { %644 = vmatpush1.bf16.msra.mxu1 %v643_v12 }
 0x110   : > { %632 = vmatmul.mubr.msk.f32.vlgmr.msra.gmra.mrb[0].mxu1 %vm449_vm2, %v442_v14 }
 0x1e3   : > { %v519_v16 = vpop.f32.mrb[0].mxu1 }
 0x1e4   : > { %v520_v17 = vadd.f32 %v519_v16, %v447_v15  ;;  %v521_v18 = vpop.f32.mrb[1].mxu1 }
 0x1e5   : > { %v522_v19 = vadd.f32 %v521_v18, %v447_v15 }
 0x1e7   : > { %v526_v20 = vcombine.low %v520_v17, %v522_v19 }
 0x1e9   : > { %v528_v21 = vadd.f32 %v526_v20, %v784_v6 }
 0x1eb   : > { %529 = vst [vmem:[%s262_s28] sm:$0xff] %v528_v21 }
 0x1ec PF: > { %s15_s20 = sadd.s32 1, %s712_s20   ;;  %s828_s18 = smov %s708_s19 }
 0x1ed   : > { %p12_p5 = scmp.ge.s32.totalorder %s15_s20, 4   ;;  %s829_s19 = smov %s831_s21 }
 0x1ef   :  { %14 = sbr.rel (!%p12_p5) target bundleno = 2 (0x2), region = 70 }

</bundles_post_ra>
